<compile_context>
chip_gen: v7x
topology: tpu7x:2x2x1
jax: 0.10.0
libtpu: 0.0.40
codegen_flags: <defaults>
</compile_context>

<pallas_src>
import jax
import jax.numpy as jnp
import numpy as np
from jax.experimental import pallas as pl
from jax.experimental.pallas import tpu as pltpu

HIDDEN = 32  # A3TGCN2Model hard-codes out_channels=32


def _a3tgcn2_kernel(x_ref, ahat_ref, wbig_ref, bbig_ref, satt_ref,
                    woutT_ref, bout_ref, out_ref):
    """Per-batch-element body (grid axis = batch, 'parallel').

    x_ref     : (N, F*T)      node features, periods kept minor (free reshape of torch layout)
    ahat_ref  : (N, N)        D^-1/2 (A+I) D^-1/2
    wbig_ref  : (F*T, 2*T*H)  composed GCN+gate weights, block-structured over periods
    bbig_ref  : (1, 2*T*H)    composed biases, tiled over periods
    satt_ref  : (T*H, H)      attention-softmax weights folded into the period-sum matrix
    woutT_ref : (T, H)        output Linear weight, transposed
    bout_ref  : (T, 1)        output Linear bias
    out_ref   : (T, N)        lane-dense output slab for this batch element
    """
    th = satt_ref.shape[0]  # T * HIDDEN

    # 1) adjacency aggregation once, shared by both gates and all periods (single MXU push)
    agg = jnp.dot(ahat_ref[...], x_ref[...], preferred_element_type=jnp.float32)   # (N, F*T)

    # 2) composed (GCNConv ∘ gate-Linear) weights for z and h gates, all periods at once
    pre = jnp.dot(agg, wbig_ref[...], preferred_element_type=jnp.float32)          # (N, 2*T*H)
    pre = pre + bbig_ref[...]

    # 3) gate nonlinearities.  Hidden state resets to zero every period (H=None in
    #    A3TGCN2.forward), so H_t = Z*0 + (1-Z)*H~ = (1-Z)*H~ and the r-gate is dead.
    z_pre = pre[:, :th]                                                            # (N, T*H)
    h_pre = pre[:, th:]                                                            # (N, T*H)
    h_t = (1.0 - jax.nn.sigmoid(z_pre)) * jnp.tanh(h_pre)                          # (N, T*H)

    # 4) attention-weighted sum over periods (softmax weights baked into satt)
    h_acc = jnp.dot(h_t, satt_ref[...], preferred_element_type=jnp.float32)        # (N, H)

    # 5) relu + output Linear, emitted lane-dense as (T, N)
    h_relu = jnp.maximum(h_acc, 0.0)
    y = jax.lax.dot_general(woutT_ref[...], h_relu, (((1,), (1,)), ((), ())),
                            preferred_element_type=jnp.float32)                    # (T, N)
    out_ref[...] = y + bout_ref[...]


def a3tgcn2_model_forward(x, ahat, params):
    """x: (B, N, F, T) float32 (torch layout); ahat: (N, N). Returns (B, T, N)."""
    B, N, F, T = x.shape
    H = HIDDEN
    f32 = jnp.float32

    # ---- fold the model's linear algebra into a few small matrices (XLA side, tiny) ----
    # Because H resets to 0 every period:
    #   pre_g = (Ahat X_t Wc_g + bc_g) @ Wl_g[:H] + bl_g
    #         = Ahat X_t (Wc_g Wl_g[:H]) + (bc_g Wl_g[:H] + bl_g)
    def compose(wc, bc, wl, bl):
        w = wc.astype(f32) @ wl[:H].astype(f32)                          # (F, H)
        b = bc.astype(f32) @ wl[:H].astype(f32) + bl.astype(f32)         # (H,)
        return w, b

    wz, bz = compose(params["w_conv_z"], params["b_conv_z"], params["w_lin_z"], params["b_lin_z"])
    wh, bh = compose(params["w_conv_h"], params["b_conv_h"], params["w_lin_h"], params["b_lin_h"])

    # Block layout over periods so the kernel is pure 2-D matmuls:
    #   Wbig[f*T + t, t*H + c]         = wz[f, c]      (z half, columns [0, T*H))
    #   Wbig[f*T + t, T*H + t*H + c]   = wh[f, c]      (h half, columns [T*H, 2*T*H))
    eye_t = jnp.eye(T, dtype=f32)
    wbig_z = jnp.einsum("fc,ts->ftsc", wz, eye_t).reshape(F * T, T * H)
    wbig_h = jnp.einsum("fc,ts->ftsc", wh, eye_t).reshape(F * T, T * H)
    wbig = jnp.concatenate([wbig_z, wbig_h], axis=1)                     # (F*T, 2*T*H)
    bbig = jnp.concatenate([jnp.tile(bz, T), jnp.tile(bh, T)]).reshape(1, 2 * T * H)

    # attention softmax folded into the period-sum matrix: satt[t*H + c, c] = probs[t]
    probs = jax.nn.softmax(params["attention"].astype(f32))
    satt = jnp.einsum("t,cd->tcd", probs, jnp.eye(H, dtype=f32)).reshape(T * H, H)

    wout_t = params["w_out"].astype(f32).T                               # (T, H)
    bout = params["b_out"].astype(f32).reshape(T, 1)                     # (T, 1)

    # Periods stay in the minor position -> this reshape is a free view; no HBM transpose of x.
    x2 = x.astype(f32).reshape(B, N, F * T)
    ahat = ahat.astype(f32)

    out = pl.pallas_call(
        _a3tgcn2_kernel,
        out_shape=jax.ShapeDtypeStruct((B, T, N), f32),
        grid=(B,),
        in_specs=[
            pl.BlockSpec((pl.Squeezed(), N, F * T), lambda b: (b, 0, 0)),  # x (per-batch slab)
            pl.BlockSpec((N, N), lambda b: (0, 0)),                        # ahat
            pl.BlockSpec((F * T, 2 * T * H), lambda b: (0, 0)),            # composed weights
            pl.BlockSpec((1, 2 * T * H), lambda b: (0, 0)),                # composed biases
            pl.BlockSpec((T * H, H), lambda b: (0, 0)),                    # attention-sum matrix
            pl.BlockSpec((T, H), lambda b: (0, 0)),                        # output weight^T
            pl.BlockSpec((T, 1), lambda b: (0, 0)),                        # output bias
        ],
        out_specs=pl.BlockSpec((pl.Squeezed(), T, N), lambda b: (b, 0, 0)),
        compiler_params=pltpu.CompilerParams(dimension_semantics=("parallel",)),
    )(x2, ahat, wbig, bbig, satt, wout_t, bout)

    return out  # (B, T, N) == torch h.permute(0, 2, 1)


def reference_forward(x, ahat, params):
    """Pure-JAX reference reproducing the torch module (unfused, per-period loop)."""
    B, N, F, T = x.shape
    probs = jax.nn.softmax(params["attention"])

    def gcn(xp, w, b):
        xw = jnp.einsum("bnf,fh->bnh", xp, w)
        return jnp.einsum("mn,bnh->bmh", ahat, xw) + b

    acc = jnp.zeros((B, N, HIDDEN), jnp.float32)
    h0 = jnp.zeros((B, N, HIDDEN), jnp.float32)
    for t in range(T):
        xp = x[:, :, :, t]
        cz = gcn(xp, params["w_conv_z"], params["b_conv_z"])
        cr = gcn(xp, params["w_conv_r"], params["b_conv_r"])
        ch = gcn(xp, params["w_conv_h"], params["b_conv_h"])
        z = jax.nn.sigmoid(jnp.concatenate([cz, h0], -1) @ params["w_lin_z"] + params["b_lin_z"])
        r = jax.nn.sigmoid(jnp.concatenate([cr, h0], -1) @ params["w_lin_r"] + params["b_lin_r"])
        ht = jnp.tanh(jnp.concatenate([ch, h0 * r], -1) @ params["w_lin_h"] + params["b_lin_h"])
        hn = z * h0 + (1.0 - z) * ht
        acc = acc + probs[t] * hn
    h = jax.nn.relu(acc)
    h = h @ params["w_out"] + params["b_out"]
    return jnp.transpose(h, (0, 2, 1))


def build_norm_adj(edge_index, num_nodes):
    """Dense GCN-normalized adjacency matching PyG gcn_norm (add_self_loops=True)."""
    src, dst = edge_index
    a = jnp.zeros((num_nodes, num_nodes), jnp.float32)
    a = a.at[dst, src].add(1.0)                        # message src -> dst : A[dst, src]
    a = a + jnp.eye(num_nodes, dtype=jnp.float32)      # self loops, weight 1
    deg = a.sum(axis=1)
    dinv = jnp.where(deg > 0, 1.0 / jnp.sqrt(deg), 0.0)
    return dinv[:, None] * a * dinv[None, :]


def init_params(key, node_features, periods):
    ks = jax.random.split(key, 16)
    p = {}
    scale_conv = 1.0 / np.sqrt(node_features)
    scale_lin = 1.0 / np.sqrt(2 * HIDDEN)
    scale_out = 1.0 / np.sqrt(HIDDEN)
    for i, g in enumerate(["z", "r", "h"]):
        p[f"w_conv_{g}"] = scale_conv * jax.random.normal(ks[i], (node_features, HIDDEN), jnp.float32)
        p[f"b_conv_{g}"] = 0.01 * jax.random.normal(ks[3 + i], (HIDDEN,), jnp.float32)
        p[f"w_lin_{g}"] = scale_lin * jax.random.normal(ks[6 + i], (2 * HIDDEN, HIDDEN), jnp.float32)
        p[f"b_lin_{g}"] = 0.01 * jax.random.normal(ks[9 + i], (HIDDEN,), jnp.float32)
    p["attention"] = jax.random.uniform(ks[12], (periods,), jnp.float32)
    p["w_out"] = scale_out * jax.random.normal(ks[13], (HIDDEN, periods), jnp.float32)
    p["b_out"] = 0.01 * jax.random.normal(ks[14], (periods,), jnp.float32)
    return p


if __name__ == "__main__":
    B, N, F, T = 2, 16, 4, 8          # batch, nodes, node_features, periods
    key = jax.random.PRNGKey(0)
    kx, kp = jax.random.split(key)

    # deterministic node features, torch layout (B, N, F, T)
    x = jax.random.normal(kx, (B, N, F, T), jnp.float32)

    # simple bidirectional ring graph edge_index (2, E)
    srcs = np.arange(N)
    dsts = (np.arange(N) + 1) % N
    edge_index = jnp.asarray(
        np.stack([np.concatenate([srcs, dsts]), np.concatenate([dsts, srcs])]), dtype=jnp.int32
    )
    ahat = build_norm_adj(edge_index, N)

    params = init_params(kp, F, T)

    out = a3tgcn2_model_forward(x, ahat, params)
    out = jax.block_until_ready(out)

    ref = reference_forward(x, ahat, params)
    np.testing.assert_allclose(np.asarray(out), np.asarray(ref), rtol=1e-4, atol=2e-5)
    assert out.shape == (B, T, N)

    print("KERNEL_OK")
</pallas_src>

<mosaic_0001>
module attributes {stable_mosaic.version = 11 : i64} {
  func.func @_a3tgcn2_kernel(%arg0: i32, %arg1: memref<1x16x32xf32, #tpu.memory_space<vmem>>, %arg2: memref<16x16xf32, #tpu.memory_space<vmem>>, %arg3: memref<32x512xf32, #tpu.memory_space<vmem>>, %arg4: memref<1x512xf32, #tpu.memory_space<vmem>>, %arg5: memref<256x32xf32, #tpu.memory_space<vmem>>, %arg6: memref<8x32xf32, #tpu.memory_space<vmem>>, %arg7: memref<8x1xf32, #tpu.memory_space<vmem>>, %arg8: memref<1x8x16xf32, #tpu.memory_space<vmem>>) attributes {dimension_semantics = [#tpu.dimension_semantics<parallel>], iteration_bounds = array<i64: 2>, scalar_prefetch = 0 : i64, scratch_operands = 0 : i64, tpu.core_type = #tpu.core_type<tc>, window_params = [{transform_indices = @transform_0, window_bounds = array<i64: 1, 16, 32>}, {pipeline_mode = #tpu.pipeline_mode<synchronous>, transform_indices = @transform_1, window_bounds = array<i64: 16, 16>}, {pipeline_mode = #tpu.pipeline_mode<synchronous>, transform_indices = @transform_2, window_bounds = array<i64: 32, 512>}, {pipeline_mode = #tpu.pipeline_mode<synchronous>, transform_indices = @transform_3, window_bounds = array<i64: 1, 512>}, {pipeline_mode = #tpu.pipeline_mode<synchronous>, transform_indices = @transform_4, window_bounds = array<i64: 256, 32>}, {pipeline_mode = #tpu.pipeline_mode<synchronous>, transform_indices = @transform_5, window_bounds = array<i64: 8, 32>}, {pipeline_mode = #tpu.pipeline_mode<synchronous>, transform_indices = @transform_6, window_bounds = array<i64: 8, 1>}, {transform_indices = @transform_7, window_bounds = array<i64: 1, 8, 16>}]} {
    %c0 = arith.constant 0 : index
    %c0_0 = arith.constant 0 : index
    %0 = vector.load %arg2[%c0, %c0_0] : memref<16x16xf32, #tpu.memory_space<vmem>>, vector<16x16xf32>
    %c0_1 = arith.constant 0 : index
    %c0_2 = arith.constant 0 : index
    %c0_3 = arith.constant 0 : index
    %1 = vector.load %arg1[%c0_1, %c0_2, %c0_3] : memref<1x16x32xf32, #tpu.memory_space<vmem>>, vector<1x16x32xf32>
    %2 = vector.shape_cast %1 : vector<1x16x32xf32> to vector<16x32xf32>
    %cst = arith.constant dense<0.000000e+00> : vector<16x32xf32>
    %3 = tpu.matmul %0, %2, %cst {dimension_numbers = #tpu.dot_dimension_numbers<[1], [0], [0], [1], [0, 0, 1, 1], [], []>} : vector<16x16xf32>, vector<16x32xf32>, vector<16x32xf32> -> vector<16x32xf32>
    %c0_4 = arith.constant 0 : index
    %c0_5 = arith.constant 0 : index
    %4 = vector.load %arg3[%c0_4, %c0_5] : memref<32x512xf32, #tpu.memory_space<vmem>>, vector<32x512xf32>
    %cst_6 = arith.constant dense<0.000000e+00> : vector<16x512xf32>
    %5 = tpu.matmul %3, %4, %cst_6 {dimension_numbers = #tpu.dot_dimension_numbers<[1], [0], [0], [1], [0, 0, 1, 1], [], []>} : vector<16x32xf32>, vector<32x512xf32>, vector<16x512xf32> -> vector<16x512xf32>
    %c0_7 = arith.constant 0 : index
    %c0_8 = arith.constant 0 : index
    %6 = vector.load %arg4[%c0_7, %c0_8] : memref<1x512xf32, #tpu.memory_space<vmem>>, vector<1x512xf32>
    %7 = vector.broadcast %6 : vector<1x512xf32> to vector<16x512xf32>
    %8 = arith.addf %5, %7 : vector<16x512xf32>
    %9 = vector.extract_strided_slice %8 {offsets = [0, 0], sizes = [16, 256], strides = [1, 1]} : vector<16x512xf32> to vector<16x256xf32>
    %10 = vector.extract_strided_slice %8 {offsets = [0, 256], sizes = [16, 256], strides = [1, 1]} : vector<16x512xf32> to vector<16x256xf32>
    %11 = arith.negf %9 : vector<16x256xf32>
    %12 = math.exp %11 : vector<16x256xf32>
    %cst_9 = arith.constant 1.000000e+00 : f32
    %13 = vector.broadcast %cst_9 : f32 to vector<16x256xf32>
    %14 = arith.addf %13, %12 : vector<16x256xf32>
    %15 = arith.divf %13, %14 : vector<16x256xf32>
    %cst_10 = arith.constant 1.000000e+00 : f32
    %16 = vector.broadcast %cst_10 : f32 to vector<16x256xf32>
    %17 = arith.subf %16, %15 : vector<16x256xf32>
    %18 = math.tanh %10 : vector<16x256xf32>
    %19 = arith.mulf %17, %18 : vector<16x256xf32>
    %c0_11 = arith.constant 0 : index
    %c0_12 = arith.constant 0 : index
    %20 = vector.load %arg5[%c0_11, %c0_12] : memref<256x32xf32, #tpu.memory_space<vmem>>, vector<256x32xf32>
    %cst_13 = arith.constant dense<0.000000e+00> : vector<16x32xf32>
    %21 = tpu.matmul %19, %20, %cst_13 {dimension_numbers = #tpu.dot_dimension_numbers<[1], [0], [0], [1], [0, 0, 1, 1], [], []>} : vector<16x256xf32>, vector<256x32xf32>, vector<16x32xf32> -> vector<16x32xf32>
    %cst_14 = arith.constant 0.000000e+00 : f32
    %22 = vector.broadcast %cst_14 : f32 to vector<16x32xf32>
    %23 = arith.maximumf %21, %22 : vector<16x32xf32>
    %c0_15 = arith.constant 0 : index
    %c0_16 = arith.constant 0 : index
    %24 = vector.load %arg6[%c0_15, %c0_16] : memref<8x32xf32, #tpu.memory_space<vmem>>, vector<8x32xf32>
    %cst_17 = arith.constant dense<0.000000e+00> : vector<8x16xf32>
    %25 = tpu.matmul %24, %23, %cst_17 {dimension_numbers = #tpu.dot_dimension_numbers<[1], [1], [0], [0], [0, 0, 1, 0], [], []>} : vector<8x32xf32>, vector<16x32xf32>, vector<8x16xf32> -> vector<8x16xf32>
    %c0_18 = arith.constant 0 : index
    %c0_19 = arith.constant 0 : index
    %26 = vector.load %arg7[%c0_18, %c0_19] : memref<8x1xf32, #tpu.memory_space<vmem>>, vector<8x1xf32>
    %27 = vector.broadcast %26 : vector<8x1xf32> to vector<8x16xf32>
    %28 = arith.addf %25, %27 : vector<8x16xf32>
    %c0_20 = arith.constant 0 : index
    %c0_21 = arith.constant 0 : index
    %c0_22 = arith.constant 0 : index
    %29 = vector.load %arg8[%c0_20, %c0_21, %c0_22] : memref<1x8x16xf32, #tpu.memory_space<vmem>>, vector<1x8x16xf32>
    %30 = vector.shape_cast %29 : vector<1x8x16xf32> to vector<8x16xf32>
    %31 = vector.shape_cast %28 : vector<8x16xf32> to vector<1x8x16xf32>
    tpu.vector_store %arg8[%c0_20, %c0_21, %c0_22], %31 {strides = array<i32>} : memref<1x8x16xf32, #tpu.memory_space<vmem>>, vector<1x8x16xf32>,
    return
  }
  func.func @transform_0(%arg0: i32) -> (i32, i32, i32) {
    %c0_i32 = arith.constant 0 : i32
    %c0_i32_0 = arith.constant 0 : i32
    %c0_i32_1 = arith.constant 0 : i32
    return %arg0, %c0_i32, %c0_i32_0 : i32, i32, i32
  }
  func.func @transform_1(%arg0: i32) -> (i32, i32) {
    %c0_i32 = arith.constant 0 : i32
    %c0_i32_0 = arith.constant 0 : i32
    %c0_i32_1 = arith.constant 0 : i32
    return %c0_i32, %c0_i32_0 : i32, i32
  }
  func.func @transform_2(%arg0: i32) -> (i32, i32) {
    %c0_i32 = arith.constant 0 : i32
    %c0_i32_0 = arith.constant 0 : i32
    %c0_i32_1 = arith.constant 0 : i32
    return %c0_i32, %c0_i32_0 : i32, i32
  }
  func.func @transform_3(%arg0: i32) -> (i32, i32) {
    %c0_i32 = arith.constant 0 : i32
    %c0_i32_0 = arith.constant 0 : i32
    %c0_i32_1 = arith.constant 0 : i32
    return %c0_i32, %c0_i32_0 : i32, i32
  }
  func.func @transform_4(%arg0: i32) -> (i32, i32) {
    %c0_i32 = arith.constant 0 : i32
    %c0_i32_0 = arith.constant 0 : i32
    %c0_i32_1 = arith.constant 0 : i32
    return %c0_i32, %c0_i32_0 : i32, i32
  }
  func.func @transform_5(%arg0: i32) -> (i32, i32) {
    %c0_i32 = arith.constant 0 : i32
    %c0_i32_0 = arith.constant 0 : i32
    %c0_i32_1 = arith.constant 0 : i32
    return %c0_i32, %c0_i32_0 : i32, i32
  }
  func.func @transform_6(%arg0: i32) -> (i32, i32) {
    %c0_i32 = arith.constant 0 : i32
    %c0_i32_0 = arith.constant 0 : i32
    %c0_i32_1 = arith.constant 0 : i32
    return %c0_i32, %c0_i32_0 : i32, i32
  }
  func.func @transform_7(%arg0: i32) -> (i32, i32, i32) {
    %c0_i32 = arith.constant 0 : i32
    %c0_i32_0 = arith.constant 0 : i32
    %c0_i32_1 = arith.constant 0 : i32
    return %arg0, %c0_i32, %c0_i32_0 : i32, i32, i32
  }
}

</mosaic_0001>

<bundles_post_ra>
// kernel: tpu_custom_call.1
= control target key start
LH: loop header
LB: loop body
LE: loop exit
PB: predicated region body
PF: predicated region fallthrough
CT: control target
= control target key end

     0   :  { %12 = vsyncpa [#allocation3], 0  ;;  %s1458_s0 = inlined_call_operand.vmem [shape: f32[2,16,32], index: 0, kind: input, shape index: {}]   ;;  %s1459_s1 = inlined_call_operand.vmem [shape: f32[16,16], index: 1, kind: input, shape index: {}]   ;;  %s1460_s2 = inlined_call_operand.vmem [shape: f32[32,512], index: 2, kind: input, shape index: {}]   ;;  %s1461_s3 = inlined_call_operand.vmem [shape: f32[1,512], index: 3, kind: input, shape index: {}]   ;;  %s1462_s4 = inlined_call_operand.vmem [shape: f32[256,32], index: 4, kind: input, shape index: {}]   ;;  %s1463_s5 = inlined_call_operand.vmem [shape: f32[8,32], index: 5, kind: input, shape index: {}]   ;;  %s1464_s6 = inlined_call_operand.vmem [shape: f32[8,1], index: 6, kind: input, shape index: {}]   ;;  %s1465_s7 = inlined_call_operand.hbm [shape: f32[2,8,16], index: 7, kind: output, shape index: {}]  }
   0x1   :  { %14 = vsyncpa [#allocation3 + $0x1], 0  ;;  %s1184_s24 = smov 0   ;;  %s1186_s25 = smov 0  }
   0x2   :  { %s1188_s26 = smov 0   ;;  %s1190_s27 = smov 0  }
   0x3 LB: > { %s1205_s28 = sadd.s32 4294967295, %s1137_s27   ;;  %s867_s29 = sadd.s32 4294967294, %s1137_s27   ;;  %s1137_s27 = sphi %s1190_s27, %s1471_s27   ;;  %s1133_s26 = sphi %s1188_s26, %s1470_s26   ;;  %s1129_s25 = sphi %s1186_s25, %s1469_s25   ;;  %s1125_s24 = sphi %s1184_s24, %s1468_s24  }
   0x4   : > { %s1209_s30 = sadd.s32 1, %s1137_s27   ;;  %s179_s8 = sadd.s32 1, %s1133_s26 }
   0x5   : > { %s176_s9 = ssub.s32 %s1137_s27, %s1209_s30  ;;  %p189_p0 = scmp.ne.s32.totalorder %s1133_s26, %s1129_s25 }
   0x6   : > { %p177_p1 = scmp.eq.s32.totalorder %s176_s9, 0  ;;  %p190_p2 = scmp.eq.s32.totalorder %s1205_s28, 1 }
   0x7   : > { %p195_p3 = scmp.ne.s32.totalorder %s1129_s25, %s1125_s24  ;;  %p196_p4 = scmp.eq.s32.totalorder %s867_s29, 1 }
   0x8   : > { %s1220_s10 = scalar_select %p177_p1, %s1133_s26, %s179_s8  }
   0x9   : > { %p1222_p5 = por %p190_p2, %p189_p0  ;;  %p1226_p6 = por %p196_p4, %p195_p3 }
   0xa   : > { %p870_p7 = scmp.ge.s32.totalorder %s1137_s27, 1  ;;  %p240_p8 = scmp.lt.s32.totalorder %s1137_s27, 3 }
   0xc   : > { %p241_p9 = pnand %p870_p7, %p240_p8 }
   0xd   : > { %p272_p10 = scmp.lt.s32.totalorder (!%p241_p9), %s1205_s28, 1  ;;  %v277_v0 = vld [vmem:[%s1459_s1] sm:$0xff] (!%p241_p9)  ;;  %vm281_vm0 = vcmask (!%p241_p9), 130048   ;;  %v364_v1 = vld [vmem:[%s1460_s2 + $0x8] sm:$0xff] (!%p241_p9)  ;;  %v366_v17 = vld [vmem:[%s1460_s2 + $0x18] sm:$0xff] (!%p241_p9)  ;;  %v1139_v20 = vmov (!%p241_p9), 0.0  }
   0xe   : > { %244 = sbr.rel (%p241_p9) target bundleno = 949 (0x3b5), region = 48  ;;  %941 = vmatprep.mubr.msk.f32.mxu0 (!%p241_p9), %vm281_vm0, %v277_v0  ;;  %v368_v2 = vld [vmem:[%s1460_s2 + $0x28] sm:$0xff] (!%p241_p9)  ;;  %v363_v7 = vld [vmem:[%s1460_s2] sm:$0xff] (!%p241_p9)  ;;  %v370_v18 = vld [vmem:[%s1460_s2 + $0x38] sm:$0xff] (!%p241_p9)  ;;  %vm401_vm1 = vcmask (!%p241_p9), 261120   ;;  %vm1141_vm2 = vmmov (!%p241_p9), 0  }
   0xf   : > { %v955_v6 = vpack.c.bf16 (!%p241_p9), %v368_v2, %v364_v1  ;;  %v367_v8 = vld [vmem:[%s1460_s2 + $0x20] sm:$0xff] (!%p241_p9)  ;;  %v372_v9 = vld [vmem:[%s1460_s2 + $0x48] sm:$0xff] (!%p241_p9)  ;;  %v963_v19 = vpack.c.bf16 (!%p241_p9), %v370_v18, %v366_v17  ;;  %v365_v21 = vld [vmem:[%s1460_s2 + $0x10] sm:$0xff] (!%p241_p9)  ;;  %s269_s9 = sand.u32 (!%p241_p9), 1, %s1129_s25   ;;  %s888_s14 = sshll.u32 (!%p241_p9), %s1205_s28, 7 }
  0x10   : > { %v376_v10 = vld [vmem:[%s1460_s2 + $0x68] sm:$0xff] (!%p241_p9)  ;;  %v957_v12 = vpack.c.bf16 (!%p241_p9), %v367_v8, %v363_v7  ;;  %v371_v14 = vld [vmem:[%s1460_s2 + $0x40] sm:$0xff] (!%p241_p9)  ;;  %v369_v22 = vld [vmem:[%s1460_s2 + $0x30] sm:$0xff] (!%p241_p9)  ;;  %s871_s13 = sshll.u32 (!%p241_p9), %s269_s9, 3  ;;  %s1415_s19 = scalar_lea.hbm (!%p241_p9), %s1465_s7, %s888_s14 }
  0x11   : > { %v278_v11 = vld [vmem:[%s1459_s1 + $0x8] sm:$0xff] (!%p241_p9)  ;;  %v959_v13 = vpack.c.bf16 (!%p241_p9), %v376_v10, %v372_v9  ;;  %v375_v15 = vld [vmem:[%s1460_s2 + $0x60] sm:$0xff] (!%p241_p9)  ;;  %v374_v23 = vld [vmem:[%s1460_s2 + $0x58] sm:$0xff] (!%p241_p9)  ;;  %v965_v25 = vpack.c.bf16 (!%p241_p9), %v369_v22, %v365_v21  ;;  %s795_s20 = scalar_lea.sflag (!%p241_p9), [#allocation3], %s269_s9 }
  0x12   : > { %v961_v16 = vpack.c.bf16 (!%p241_p9), %v375_v15, %v371_v14  ;;  %v378_v24 = vld [vmem:[%s1460_s2 + $0x78] sm:$0xff] (!%p241_p9)  ;;  %v373_v28 = vld [vmem:[%s1460_s2 + $0x50] sm:$0xff] (!%p241_p9)  ;;  %v614_v32 = vld [vmem:[%s1462_s4 + $0x80] sm:$0xff] (!%p241_p9) }
  0x13   : > { %v967_v27 = vpack.c.bf16 (!%p241_p9), %v378_v24, %v374_v23  ;;  %v377_v29 = vld [vmem:[%s1460_s2 + $0x70] sm:$0xff] (!%p241_p9)  ;;  %v615_v33 = vld [vmem:[%s1462_s4 + $0x88] sm:$0xff] (!%p241_p9)  ;;  %v598_v35 = vld [vmem:[%s1462_s4] sm:$0xff] (!%p241_p9) }
  0x14   : > { %v969_v31 = vpack.c.bf16 (!%p241_p9), %v377_v29, %v373_v28  ;;  %v971_v34 = vpack.c.bf16 (!%p241_p9), %v615_v33, %v614_v32  ;;  %v599_v36 = vld [vmem:[%s1462_s4 + $0x8] sm:$0xff] (!%p241_p9)  ;;  %v616_v38 = vld [vmem:[%s1462_s4 + $0x90] sm:$0xff] (!%p241_p9)  ;;  %v617_v39 = vld [vmem:[%s1462_s4 + $0x98] sm:$0xff] (!%p241_p9) }
  0x15   : > { %s273_s15 = scalar_select %p272_p10, %s1205_s28, 1  ;;  %v973_v37 = vpack.c.bf16 %v599_v36, %v598_v35  ;;  %v975_v40 = vpack.c.bf16 %v617_v39, %v616_v38  ;;  %v600_v41 = vld [vmem:[%s1462_s4 + $0x10] sm:$0xff]  ;;  %v601_v42 = vld [vmem:[%s1462_s4 + $0x18] sm:$0xff]  ;;  %v618_v44 = vld [vmem:[%s1462_s4 + $0xa0] sm:$0xff] }
  0x16   : > { %972 = vmatprep.subr.bf16.mxu1 %v971_v34  ;;  %v977_v43 = vpack.c.bf16 %v601_v42, %v600_v41  ;;  %v619_v45 = vld [vmem:[%s1462_s4 + $0xa8] sm:$0xff]  ;;  %v602_v47 = vld [vmem:[%s1462_s4 + $0x20] sm:$0xff]  ;;  %v620_v50 = vld [vmem:[%s1462_s4 + $0xb0] sm:$0xff]  ;;  %s1143_s28 = smov [#allocation2]  }
  0x17   : > { %s891_s16 = sshll.u32 %s273_s15, 4  ;;  %974 = vmatpush3.bf16.msra.mxu1 %v973_v37  ;;  %v979_v46 = vpack.c.bf16 %v619_v45, %v618_v44  ;;  %v603_v48 = vld [vmem:[%s1462_s4 + $0x28] sm:$0xff]  ;;  %v621_v51 = vld [vmem:[%s1462_s4 + $0xb8] sm:$0xff]  ;;  %v604_v53 = vld [vmem:[%s1462_s4 + $0x30] sm:$0xff]  ;;  %s271_s15 = scalar_lea.vmem [#allocation2], %s871_s13 }
  0x18   : > { %s276_s23 = scalar_lea.vmem %s1458_s0, %s891_s16  ;;  %976 = vmatprep.subr.bf16.mxu1 %v975_v40  ;;  %v981_v49 = vpack.c.bf16 %v603_v48, %v602_v47  ;;  %v983_v52 = vpack.c.bf16 %v621_v51, %v620_v50  ;;  %v605_v54 = vld [vmem:[%s1462_s4 + $0x38] sm:$0xff]  ;;  %v622_v56 = vld [vmem:[%s1462_s4 + $0xc0] sm:$0xff]  ;;  %v623_v57 = vld [vmem:[%s1462_s4 + $0xc8] sm:$0xff]  ;;  %s808_s17 = sshll.u32 %s271_s15, 4  ;;  %s1417_s17 = int_to_ptr.vmem [resolvable:$true] %s808_s17 }
  0x19   : > { %v279_v3 = vld [vmem:[%s276_s23] sm:$0xff]  ;;  %v280_v4 = vld [vmem:[%s276_s23 + $0x8] sm:$0xff]  ;;  %v985_v55 = vpack.c.bf16 %v605_v54, %v604_v53  ;;  %v987_v58 = vpack.c.bf16 %v623_v57, %v622_v56  ;;  %v624_v62 = vld [vmem:[%s1462_s4 + $0xd0] sm:$0xff]  ;;  %s1075_s21 = scalar_lea.vmem %s1417_s17, 128  ;;  %s1079_s22 = sshll.u32 %s1143_s28, 4  ;;  %s1080_s22 = int_to_ptr.vmem [resolvable:$false] %s1079_s22 }
  0x1a   : > { %v951_v5 = vpack.c.bf16 %v280_v4, %v279_v3  ;;  %v606_v59 = vld [vmem:[%s1462_s4 + $0x40] sm:$0xff]  ;;  %v607_v60 = vld [vmem:[%s1462_s4 + $0x48] sm:$0xff]  ;;  %v625_v63 = vld [vmem:[%s1462_s4 + $0xd8] sm:$0xff]  ;;  %p1076_p11 = scmp.ne.s32.totalorder %s1417_s17, %s1075_s21  ;;  %s1081_s23 = scalar_lea.vmem %s1080_s22, 256 }
  0x1b   : > { %978 = vmatpush3.bf16.msra.mxu1 %v977_v43  ;;  %v989_v61 = vpack.c.bf16 %v607_v60, %v606_v59  ;;  %v991_v0 = vpack.c.bf16 %v625_v63, %v624_v62  ;;  %v608_v1 = vld [vmem:[%s1462_s4 + $0x50] sm:$0xff]  ;;  %v609_v2 = vld [vmem:[%s1462_s4 + $0x58] sm:$0xff]  ;;  %v626_v4 = vld [vmem:[%s1462_s4 + $0xe0] sm:$0xff]  ;;  %p1082_p0 = scmp.lt.s32.totalorder %s1417_s17, %s1080_s22  ;;  %p1083_p1 = scmp.lt.s32.totalorder %s1081_s23, %s1075_s21 }
  0x1c   : > { %952 = vmatprep.subr.bf16.mxu0 %v951_v5  ;;  %980 = vmatprep.subr.bf16.mxu1 %v979_v46  ;;  %v993_v3 = vpack.c.bf16 %v609_v2, %v608_v1  ;;  %v611_v8 = vld [vmem:[%s1462_s4 + $0x68] sm:$0xff]  ;;  %v628_v9 = vld [vmem:[%s1462_s4 + $0xf0] sm:$0xff]  ;;  %v629_v10 = vld [vmem:[%s1462_s4 + $0xf8] sm:$0xff]  ;;  %p1077_p12 = pnand %p1076_p11, %p1222_p5 }
  0x1d   : > { %954 = vmatpush3.bf16.msra.mxu0 %v951_v5  ;;  %v627_v5 = vld [vmem:[%s1462_s4 + $0xe8] sm:$0xff]  ;;  %v613_v14 = vld [vmem:[%s1462_s4 + $0x78] sm:$0xff]  ;;  %vm1005_vm3 = vmpackc.low %vm401_vm1, %vm401_vm1  ;;  %p1084_p2 = por %p1083_p1, %p1082_p0 }
  0x1e   : > { %956 = vmatprep.subr.bf16.mxu0 %v955_v6  ;;  %v610_v6 = vld [vmem:[%s1462_s4 + $0x60] sm:$0xff]  ;;  %v995_v7 = vpack.c.bf16 %v627_v5, %v626_v4  ;;  %p1078_p13 = pneg %p1077_p12 }
  0x1f   : > { %982 = vmatpush3.bf16.msra.mxu1 %v981_v49 }
  0x20   : > { %942 = vmatmul.mubr.msk.f32.vlgmr.msra.gmra.mrb[0].mxu0 %vm281_vm0, %v278_v11  ;;  %984 = vmatprep.subr.bf16.mxu1 %v983_v52  ;;  %v997_v11 = vpack.c.bf16 %v611_v8, %v610_v6  ;;  %v1140_v8 = vmov 0.0|0.0   ;;  %p1085_p3 = pnand %p1084_p2, %p1078_p13 }
  0x21   : > { %958 = vmatpush1.bf16.msra.mxu0 %v957_v12  ;;  %472 = vmatprep.mubr.f32.mxu0 %v1139_v20  ;;  %v999_v12 = vpack.c.bf16 %v629_v10, %v628_v9  ;;  %v708_v9 = vld [vmem:[%s1464_s6] sm:$0xff]  ;;  %v1142_v10 = vmov 0  }
  0x22   : > { %960 = vmatprep.subr.bf16.mxu0 %v959_v13  ;;  %v612_v13 = vld [vmem:[%s1462_s4 + $0x70] sm:$0xff]  ;;  %1050 = vset.pattern.permute.xlu0 %v1142_v10 }
  0x23   : > { %986 = vmatpush3.bf16.msra.mxu1 %v985_v55  ;;  %v1001_v15 = vpack.c.bf16 %v613_v14, %v612_v13  ;;  %711 = vperm.xlu0 %1050, %v708_v9  }
  0x24   : > { %988 = vmatprep.subr.bf16.mxu1 %v987_v58 }
  0x25   : > { %962 = vmatpush1.bf16.msra.mxu0 %v961_v16  ;;  %v381_v16 = vlaneseq }
  0x26   : > { %964 = vmatprep.subr.bf16.mxu0 %v963_v19  ;;  %v379_v19 = vld [vmem:[%s1461_s3] sm:$0xf] }
  0x27   : > { %990 = vmatpush3.bf16.msra.mxu1 %v989_v61  ;;  %v382_v17 = vshrl.u32 %v381_v16, 7 }
  0x28   : > { %992 = vmatprep.subr.bf16.mxu1 %v991_v0 }
  0x29   : > { %v383_v18 = vsub.s32 0, %v382_v17  ;;  %v387_v21 = vsub.s32 1, %v382_v17  ;;  %v391_v36 = vsub.s32 2, %v382_v17  ;;  %v395_v38 = vsub.s32 3, %v382_v17 }
  0x2b   : > { %994 = vmatpush3.bf16.msra.mxu1 %v993_v3  ;;  %v384_v22 = vrot.slane %v379_v19, %v383_v18  ;;  %v388_v23 = vrot.slane %v379_v19, %v387_v21  ;;  %v392_v40 = vrot.slane %v379_v19, %v391_v36  ;;  %v396_v42 = vrot.slane %v379_v19, %v395_v38  ;;  %v707_v19 = vld [vmem:[%s1463_s5] sm:$0xff] }
  0x2c   : > { %996 = vmatprep.subr.bf16.mxu1 %v995_v7 }
  0x2f   : > { %998 = vmatpush3.bf16.msra.mxu1 %v997_v11 }
  0x30   : > { %1000 = vmatprep.subr.bf16.mxu1 %v999_v12 }
  0x33   : > { %1002 = vmatpush3.bf16.msra.mxu1 %v1001_v15 }
  0xa2   : > { %v712_v21 = vpop.permute.xlu0 %711 }
  0xf3   : > { %v943_v26 = vpop.f32.mrb[0].mxu0 }
  0xf4   : > { %v354_v30 = vpop.f32.mrb[1].mxu0 }
  0xf5   : > { %876 = vmatmul.mubr.msk.f32.vlgmr.msra.gmra.mrb[2].mxu0 %vm401_vm1, %v354_v30 }
  0xf6   : > { %966 = vmatpush1.bf16.msra.mxu0 %v965_v25  ;;  %478 = vmatprep.mubr.f32.mxu0 %v1139_v20 }
  0xf7   : > { %968 = vmatprep.subr.bf16.mxu0 %v967_v27 }
  0xf9   : > { %877 = vmatmul.mubr.msk.f32.gmra.mrb[4].mxu0 %vm401_vm1, %v943_v26 }
  0xfa   : > { %970 = vmatpush1.bf16.msra.mxu0 %v969_v31  ;;  %549 = vmatprep.mubr.f32.mxu0 %v1139_v20 }
  0xfb   : > { %1003 = vmatprep.subr.bf16.mxu0 %v1140_v8 }
  0xfd   : > { %878 = vmatmul.mubr.msk.f32.vlgmr.msra.gmra.mrb[6].mxu0 %vm401_vm1, %v354_v30 }
  0xfe   : > { %555 = vmatprep.mubr.f32.mxu0 %v1139_v20 }
 0x101   : > { %879 = vmatmul.mubr.msk.f32.gmra.mrb[8].mxu0 %vm401_vm1, %v943_v26 }
 0x102   : > { %948 = vmatprep.mubr.msk.f32.mxu0 %vm1141_vm2, %v1139_v20 }
 0x1c8   : > { %v474_v24 = vpop.f32.mrb[2].mxu0 }
 0x1c9   : > { %v475_v25 = vadd.f32 %v474_v24, %v384_v22  ;;  %v476_v26 = vpop.f32.mrb[3].mxu0 }
 0x1ca   : > { %v477_v27 = vadd.f32 %v476_v26, %v388_v23 }
 0x1cb   : > { %v880_v28 = vmul.f32 -1.442695, %v475_v25 }
 0x1cc   : > { %v881_v29 = vmul.f32 -1.442695, %v477_v27  ;;  %v480_v30 = vpop.f32.mrb[4].mxu0 }
 0x1cd   : > { %1051 = vpow2.f32 %v880_v28  ;;  %v481_v31 = vadd.f32 %v480_v30, %v384_v22  ;;  %v482_v32 = vpop.f32.mrb[5].mxu0 }
 0x1ce   : > { %1053 = vpow2.f32 %v881_v29  ;;  %v483_v33 = vadd.f32 %v482_v32, %v388_v23 }
 0x1cf   : > { %v882_v34 = vmul.f32 -1.442695, %v481_v31 }
 0x1d0   : > { %v883_v35 = vmul.f32 -1.442695, %v483_v33  ;;  %v551_v37 = vpop.f32.mrb[6].mxu0 }
 0x1d1   : > { %1055 = vpow2.f32 %v882_v34  ;;  %v553_v39 = vpop.f32.mrb[7].mxu0  ;;  %v552_v47 = vadd.f32 %v551_v37, %v392_v40 }
 0x1d2   : > { %1057 = vpow2.f32 %v883_v35  ;;  %v554_v49 = vadd.f32 %v553_v39, %v396_v42 }
 0x1d4   : > { %v557_v41 = vpop.f32.mrb[8].mxu0 }
 0x1d5   : > { %v559_v43 = vpop.f32.mrb[9].mxu0  ;;  %v558_v53 = vadd.f32 %v557_v41, %v392_v40 }
 0x1d6   : > { %v560_v55 = vadd.f32 %v559_v43, %v396_v42 }
 0x1d7   : > { %v1052_v44 = vpop.eup %1051 }
 0x1d8   : > { %v1054_v45 = vpop.eup %1053  ;;  %v574_v46 = vadd.f32 1.0, %v1052_v44 }
 0x1d9   : > { %v575_v48 = vadd.f32 1.0, %v1054_v45 }
 0x1da   : > { %1059 = vrcp.f32 %v574_v46 }
 0x1db   : > { %v1056_v50 = vpop.eup %1055  ;;  %1061 = vrcp.f32 %v575_v48 }
 0x1dc   : > { %v1058_v51 = vpop.eup %1057  ;;  %v576_v52 = vadd.f32 1.0, %v1056_v50  ;;  %1063 = vtanh.f32 %v552_v47 }
 0x1dd   : > { %v577_v54 = vadd.f32 1.0, %v1058_v51  ;;  %1065 = vtanh.f32 %v554_v49 }
 0x1de   : > { %1067 = vrcp.f32 %v576_v52 }
 0x1df   : > { %1069 = vrcp.f32 %v577_v54 }
 0x1e0   : > { %1071 = vtanh.f32 %v558_v53 }
 0x1e1   : > { %1073 = vtanh.f32 %v560_v55 }
 0x1e4   : > { %v1060_v56 = vpop.eup %1059 }
 0x1e5   : > { %v1062_v57 = vpop.eup %1061  ;;  %v586_v58 = vsub.f32 1.0, %v1060_v56 }
 0x1e6   : > { %v1064_v59 = vpop.eup %1063  ;;  %v587_v60 = vsub.f32 1.0, %v1062_v57 }
 0x1e7   : > { %v1066_v61 = vpop.eup %1065  ;;  %v594_v62 = vmul.f32 %v1064_v59, %v586_v58 }
 0x1e8   : > { %v1068_v63 = vpop.eup %1067  ;;  %v595_v0 = vmul.f32 %v1066_v61, %v587_v60 }
 0x1e9   : > { %v1070_v1 = vpop.eup %1069  ;;  %v588_v2 = vsub.f32 1.0, %v1068_v63 }
 0x1ea   : > { %v1072_v3 = vpop.eup %1071  ;;  %694 = vmatprep.mubr.f32.mxu1 %v595_v0  ;;  %v589_v4 = vsub.f32 1.0, %v1070_v1 }
 0x1eb   : > { %v1074_v5 = vpop.eup %1073  ;;  %695 = vmatmul.mubr.f32.vlgmr.msra.gmra.mrb[0].mxu1 %v594_v62  ;;  %v596_v6 = vmul.f32 %v1072_v3, %v588_v2 }
 0x1ec   : > { %v597_v7 = vmul.f32 %v1074_v5, %v589_v4 }
 0x1ee   : > { %699 = vmatprep.mubr.f32.mxu1 %v597_v7 }
 0x1ef   : > { %700 = vmatmul.mubr.f32.gmra.mrb[2].mxu1 %v596_v6 }
 0x2be   : > { %v928_v11 = vpop.f32.mrb[0].mxu1 }
 0x2bf   : > { %v929_v12 = vpop.f32.mrb[1].mxu1 }
 0x2c0   : > { %v930_v13 = vadd.f32 %v929_v12, %v928_v11 }
 0x2c2   : > { %v931_v14 = vpop.f32.mrb[2].mxu1  ;;  %v705_v17 = vmax.f32 %v930_v13, 0.0 }
 0x2c3   : > { %v932_v15 = vpop.f32.mrb[3].mxu1 }
 0x2c4   : > { %v933_v16 = vadd.f32 %v932_v15, %v931_v14 }
 0x2c6   : > { %v706_v18 = vmax.f32 %v933_v16, 0.0 }
 0x2c8   : > { %v1004_v20 = vpack.c.bf16 %v706_v18, %v705_v17 }
 0x2ca   : > { %1006 = vmatpush3.bf16.xpose.msk.msra.mxu0 %vm1005_vm3, %v1004_v20 }
 0x2d1   : > { %949 = vmatmul.mubr.msk.f32.vlgmr.msra.gmra.mrb[10].mxu0 %vm401_vm1, %v707_v19 }
 0x3a4   : > { %v789_v22 = vpop.f32.mrb[10].mxu0 }
 0x3a5   : > { %v790_v23 = vadd.f32 %v789_v22, %v712_v21  ;;  %v950_v24 = vpop.f32.mrb[11].mxu0 }
 0x3a7   : > { %793 = vst.msk [vmem:[%s271_s15] sm:$0xff] %vm281_vm0, %v790_v23 }
 0x3a8   : > { %1088 = shalt.err (!%p1085_p3)
}
 0x3a9   : > { %s1089_s29 = scalar_lea.hbm %s1415_s19, 128  ;;  %s1093_s13 = scalar_lea.hbm %s1465_s7, 256 }
 0x3aa   : > { %p1090_p4 = scmp.ne.s32.totalorder %s1415_s19, %s1089_s29  ;;  %p1094_p9 = scmp.lt.u32.totalorder %s1415_s19, %s1465_s7 }
 0x3ab   : > { %p1095_p10 = scmp.lt.u32.totalorder %s1093_s13, %s1089_s29  ;;  %p1097_p12 = scmp.lt.u32.totalorder %s1089_s29, %s1415_s19 }
 0x3ac   : > { %p1091_p7 = pnand %p1090_p4, %p1222_p5 }
 0x3ad   : > { %p1096_p11 = por %p1095_p10, %p1094_p9 }
 0x3ae   : > { %p1092_p8 = pneg %p1091_p7 }
 0x3af   : > { %p1098_p13 = por %p1097_p12, %p1096_p11 }
 0x3b1   : > { %p1099_p0 = pnand %p1098_p13, %p1092_p8 }
 0x3b3   : > { %1102 = shalt.err (!%p1099_p0)
}
 0x3b4   : > { %1007 = dma.vmem_to_hbm [thread:$0]  (%p1222_p5), %s1417_s17, 128, %s1415_s19, %s795_s20  }
 0x3b5 PF: > { %p1013_p1 = scmp.ge.s32.totalorder %s1137_s27, 2  ;;  %s820_s18 = sand.u32 1, %s1125_s24  }
 0x3b6   : > { %s821_s16 = scalar_lea.sflag [#allocation3], %s820_s18 }
 0x3b7   : > { %p1010_p2 = pnand %p1013_p1, %p1226_p6 }
 0x3b9   : > { %1120 = dma.done.wait (!%p1010_p2), %s821_s16, 128  }
 0x3ba   : > { %1122 = vsyncadd (!%p1010_p2), %s821_s16, 4294967168  ;;  %p17_p3 = scmp.ge.s32.totalorder %s1209_s30, 4   ;;  %s1468_s24 = smov %s1129_s25 }
 0x3bb   : > { %s1469_s25 = smov %s1133_s26  ;;  %s1470_s26 = smov %s1220_s10 }
 0x3bc   : > { %s1471_s27 = smov %s1209_s30  ;;  %19 = sbr.rel (!%p17_p3) target bundleno = 3 (0x3), region = 83 }
 0x3c3   :  { %826 = vsyncpa [#allocation3], 1 }
 0x3c4   :  { %828 = vsyncpa [#allocation3 + $0x1], 1 }

</bundles_post_ra>
